<compile_context>
chip_gen: v6e
topology: v6e:2x2x1
jax: 0.10.0
libtpu: 0.0.40
codegen_flags: <defaults>
</compile_context>

<pallas_src>
import jax
import jax.numpy as jnp
from jax.experimental import pallas as pl
from jax.experimental.pallas import tpu as pltpu


def _round_up(x, m):
    return ((x + m - 1) // m) * m


# ----------------------------- Pallas kernel ------------------------------ #
def _siamese_encoder_kernel(ids_ref, table_ref, out_ref):
    # ids_ref:   (L*Np, 1) int32  token ids, TOKEN-MAJOR: row t*Np + s = token t of sentence s
    # table_ref: (Vp, Hp)  f32    precomputed transformed table T = emb @ W^T + b (zero-padded)
    # out_ref:   (Np, Hp)  f32    max-pooled sentence vectors (padded; sliced in wrapper)
    n_pad, _ = out_ref.shape
    ln = ids_ref.shape[0]
    seq_len = ln // n_pad
    v_pad = table_ref.shape[0]

    # Fused embedding gather + Linear as an exact one-hot matmul (0/1 weights).
    # Padding token 0 selects the bias row of T, identical to PyTorch Linear(0) = b.
    ids = ids_ref[...]                                                # (L*Np, 1)
    vocab_iota = jax.lax.broadcasted_iota(jnp.int32, (1, v_pad), 1)   # (1, Vp)
    onehot = (ids == vocab_iota).astype(jnp.float32)                  # (L*Np, Vp)
    y = jnp.dot(onehot, table_ref[...],
                preferred_element_type=jnp.float32)                   # (L*Np, Hp)

    # Max-pool over the sequence axis: running VPU maximum over contiguous,
    # sublane-aligned (Np, Hp) slabs (token-major layout) — no reshape, no XLU reduce.
    acc = y[0:n_pad, :]
    for t in range(1, seq_len):
        acc = jnp.maximum(acc, y[t * n_pad:(t + 1) * n_pad, :])
    out_ref[...] = acc.astype(out_ref.dtype)


# ------------------------------ host wrapper ------------------------------- #
def siamese_encode_pallas(token_ids, table_padded, hidden_size):
    """Encode N sentences (N, L) int32 -> (N, hidden_size) f32 in one kernel call."""
    n, seq_len = token_ids.shape
    v_pad, h_pad = table_padded.shape

    # Pad the sentence axis to a sublane multiple so every token slab of y is
    # aligned; padded sentences use token 0 (bias row) and are sliced away.
    n_pad = _round_up(max(n, 8), 8)
    ids = jnp.zeros((n_pad, seq_len), jnp.int32).at[:n].set(token_ids.astype(jnp.int32))
    ids_token_major = ids.T.reshape(seq_len * n_pad, 1)   # row t*n_pad + s

    cost = pl.CostEstimate(
        flops=2 * (seq_len * n_pad) * v_pad * h_pad,
        transcendentals=0,
        bytes_accessed=4 * (seq_len * n_pad + v_pad * h_pad + n_pad * h_pad),
    )

    out = pl.pallas_call(
        _siamese_encoder_kernel,
        out_shape=jax.ShapeDtypeStruct((n_pad, h_pad), jnp.float32),
        grid_spec=pltpu.PrefetchScalarGridSpec(
            num_scalar_prefetch=0,
            grid=(1,),  # single launch; toy sizes are overhead-bound
            in_specs=[
                pl.BlockSpec((seq_len * n_pad, 1), lambda i: (0, 0)),  # token ids
                pl.BlockSpec((v_pad, h_pad), lambda i: (0, 0)),        # transformed table T
            ],
            out_specs=pl.BlockSpec((n_pad, h_pad), lambda i: (0, 0)),
        ),
        compiler_params=pltpu.CompilerParams(
            dimension_semantics=("arbitrary",),
        ),
        cost_estimate=cost,
    )(ids_token_major, table_padded)

    return out[:n, :hidden_size]


# --------------------------- module-level wrapper -------------------------- #
class SiameseNetworkPallas:
    def __init__(self, config, key):
        hidden_size = config["hidden_size"]
        vocab_size = config["vocab_size"] + 1

        k_emb, k_w, k_b = jax.random.split(key, 3)
        emb = jax.random.normal(k_emb, (vocab_size, hidden_size), jnp.float32) * 0.02
        emb = emb.at[0].set(0.0)  # padding_idx=0 -> zero embedding row

        # nn.Linear(hidden, hidden): weight (out, in), y = x @ W.T + b.
        w = jax.random.normal(k_w, (hidden_size, hidden_size), jnp.float32) * 0.05
        b = jax.random.normal(k_b, (hidden_size,), jnp.float32) * 0.01
        # Dropout(0.5) is a no-op in eval / inference; omitted.

        self.emb_table = emb
        self.weight = w
        self.bias = b
        self.hidden_size = hidden_size
        self.vocab_size = vocab_size

        # Hoisted weight transform (review item 1): T[v] = emb[v] @ W^T + b,
        # computed ONCE here, zero-padded to lane-dense (128-multiple) dims.
        table = emb @ w.T + b                                     # (V, H)
        v_pad = _round_up(vocab_size, 128)
        h_pad = _round_up(hidden_size, 128)
        self.table_padded = (
            jnp.zeros((v_pad, h_pad), jnp.float32).at[:vocab_size, :hidden_size].set(table)
        )

    def encode(self, ids):
        return siamese_encode_pallas(ids, self.table_padded, self.hidden_size)

    def forward(self, anchor, positive=None, negative=None, is_training=False):
        # TODO(synk): training branch (TripletMarginLoss) and the two-input
        # cosine_distance branch (which references an undefined
        # self.cosine_similarity in the original PyTorch module) are not
        # implemented; only the vector-encoding inference paths are.
        B = anchor.shape[0]
        if positive is None and negative is None:
            return self.encode(anchor)
        if negative is None:
            vecs = self.encode(jnp.concatenate([anchor, positive], axis=0))
            return vecs[:B], vecs[B:]
        # Fused path: one kernel call for all three sentences of the triplet.
        vecs = self.encode(jnp.concatenate([anchor, positive, negative], axis=0))
        return vecs[:B], vecs[B:2 * B], vecs[2 * B:]


# --------------------------------- main ------------------------------------ #
if __name__ == "__main__":
    config = {"hidden_size": 32, "vocab_size": 49, "max_length": 8}
    B, L = 2, config["max_length"]

    key = jax.random.PRNGKey(0)
    k_params, k_a, k_p, k_n = jax.random.split(key, 4)

    model = SiameseNetworkPallas(config, k_params)

    vocab = config["vocab_size"] + 1
    anchor = jax.random.randint(k_a, (B, L), 0, vocab, dtype=jnp.int32)
    positive = jax.random.randint(k_p, (B, L), 0, vocab, dtype=jnp.int32)
    negative = jax.random.randint(k_n, (B, L), 0, vocab, dtype=jnp.int32)

    va, vp, vn = model.forward(anchor, positive, negative)
    jax.block_until_ready((va, vp, vn))

    # lightweight sanity check against a pure-JAX reference
    def ref_encode(ids):
        e = jnp.take(model.emb_table, ids, axis=0)        # (B, L, H)
        y = e @ model.weight.T + model.bias               # (B, L, H)
        return jnp.max(y, axis=1)                         # (B, H)

    assert va.shape == (B, config["hidden_size"])
    assert jnp.allclose(va, ref_encode(anchor), atol=1e-5)
    assert jnp.allclose(vp, ref_encode(positive), atol=1e-5)
    assert jnp.allclose(vn, ref_encode(negative), atol=1e-5)

    # single-input path sanity
    v_single = model.forward(anchor)
    jax.block_until_ready(v_single)
    assert jnp.allclose(v_single, ref_encode(anchor), atol=1e-5)

    print("KERNEL_OK")
</pallas_src>

<mosaic_0001>
module attributes {stable_mosaic.version = 11 : i64} {
  func.func @_siamese_encoder_kernel(%arg0: i32, %arg1: memref<64x1xi32, #tpu.memory_space<vmem>>, %arg2: memref<128x128xf32, #tpu.memory_space<vmem>>, %arg3: memref<8x128xf32, #tpu.memory_space<vmem>>) attributes {dimension_semantics = [#tpu.dimension_semantics<arbitrary>], iteration_bounds = array<i64: 1>, scalar_prefetch = 0 : i64, scratch_operands = 0 : i64, tpu.core_type = #tpu.core_type<tc>, window_params = [{pipeline_mode = #tpu.pipeline_mode<synchronous>, transform_indices = @transform_0, window_bounds = array<i64: 64, 1>}, {pipeline_mode = #tpu.pipeline_mode<synchronous>, transform_indices = @transform_1, window_bounds = array<i64: 128, 128>}, {pipeline_mode = #tpu.pipeline_mode<synchronous>, transform_indices = @transform_2, window_bounds = array<i64: 8, 128>}]} {
    %c0 = arith.constant 0 : index
    %c0_0 = arith.constant 0 : index
    %0 = vector.load %arg1[%c0, %c0_0] : memref<64x1xi32, #tpu.memory_space<vmem>>, vector<64x1xi32>
    %1 = tpu.iota {dimensions = array<i32: 1>} : vector<1x128xi32>
    %2 = vector.broadcast %0 : vector<64x1xi32> to vector<64x128xi32>
    %3 = vector.broadcast %1 : vector<1x128xi32> to vector<64x128xi32>
    %4 = arith.cmpi eq, %2, %3 : vector<64x128xi32>
    %5 = arith.extui %4 : vector<64x128xi1> to vector<64x128xi32>
    %6 = arith.sitofp %5 : vector<64x128xi32> to vector<64x128xf32>
    %c0_1 = arith.constant 0 : index
    %c0_2 = arith.constant 0 : index
    %7 = vector.load %arg2[%c0_1, %c0_2] : memref<128x128xf32, #tpu.memory_space<vmem>>, vector<128x128xf32>
    %cst = arith.constant dense<0.000000e+00> : vector<64x128xf32>
    %8 = tpu.matmul %6, %7, %cst {dimension_numbers = #tpu.dot_dimension_numbers<[1], [0], [0], [1], [0, 0, 1, 1], [], []>} : vector<64x128xf32>, vector<128x128xf32>, vector<64x128xf32> -> vector<64x128xf32>
    %9 = vector.extract_strided_slice %8 {offsets = [0, 0], sizes = [8, 128], strides = [1, 1]} : vector<64x128xf32> to vector<8x128xf32>
    %10 = vector.extract_strided_slice %8 {offsets = [8, 0], sizes = [8, 128], strides = [1, 1]} : vector<64x128xf32> to vector<8x128xf32>
    %11 = arith.maximumf %9, %10 : vector<8x128xf32>
    %12 = vector.extract_strided_slice %8 {offsets = [16, 0], sizes = [8, 128], strides = [1, 1]} : vector<64x128xf32> to vector<8x128xf32>
    %13 = arith.maximumf %11, %12 : vector<8x128xf32>
    %14 = vector.extract_strided_slice %8 {offsets = [24, 0], sizes = [8, 128], strides = [1, 1]} : vector<64x128xf32> to vector<8x128xf32>
    %15 = arith.maximumf %13, %14 : vector<8x128xf32>
    %16 = vector.extract_strided_slice %8 {offsets = [32, 0], sizes = [8, 128], strides = [1, 1]} : vector<64x128xf32> to vector<8x128xf32>
    %17 = arith.maximumf %15, %16 : vector<8x128xf32>
    %18 = vector.extract_strided_slice %8 {offsets = [40, 0], sizes = [8, 128], strides = [1, 1]} : vector<64x128xf32> to vector<8x128xf32>
    %19 = arith.maximumf %17, %18 : vector<8x128xf32>
    %20 = vector.extract_strided_slice %8 {offsets = [48, 0], sizes = [8, 128], strides = [1, 1]} : vector<64x128xf32> to vector<8x128xf32>
    %21 = arith.maximumf %19, %20 : vector<8x128xf32>
    %22 = vector.extract_strided_slice %8 {offsets = [56, 0], sizes = [8, 128], strides = [1, 1]} : vector<64x128xf32> to vector<8x128xf32>
    %23 = arith.maximumf %21, %22 : vector<8x128xf32>
    %c0_3 = arith.constant 0 : index
    %c0_4 = arith.constant 0 : index
    %24 = vector.load %arg3[%c0_3, %c0_4] : memref<8x128xf32, #tpu.memory_space<vmem>>, vector<8x128xf32>
    tpu.vector_store %arg3[%c0_3, %c0_4], %23 {strides = array<i32>} : memref<8x128xf32, #tpu.memory_space<vmem>>, vector<8x128xf32>,
    return
  }
  func.func @transform_0(%arg0: i32) -> (i32, i32) {
    %c0_i32 = arith.constant 0 : i32
    %c0_i32_0 = arith.constant 0 : i32
    %c0_i32_1 = arith.constant 0 : i32
    return %c0_i32, %c0_i32_0 : i32, i32
  }
  func.func @transform_1(%arg0: i32) -> (i32, i32) {
    %c0_i32 = arith.constant 0 : i32
    %c0_i32_0 = arith.constant 0 : i32
    %c0_i32_1 = arith.constant 0 : i32
    return %c0_i32, %c0_i32_0 : i32, i32
  }
  func.func @transform_2(%arg0: i32) -> (i32, i32) {
    %c0_i32 = arith.constant 0 : i32
    %c0_i32_0 = arith.constant 0 : i32
    %c0_i32_1 = arith.constant 0 : i32
    return %c0_i32, %c0_i32_0 : i32, i32
  }
}

</mosaic_0001>

<bundles_post_ra>
// kernel: tpu_custom_call.1
= control target key start
LH: loop header
LB: loop body
LE: loop exit
PB: predicated region body
PF: predicated region fallthrough
CT: control target
= control target key end

     0   :  { %7 = vsyncpa [#allocation3], 0  ;;  %s447_s0 = inlined_call_operand.vmem [shape: s32[64,1], index: 0, kind: input, shape index: {}]   ;;  %s448_s1 = inlined_call_operand.hbm [shape: f32[128,128], index: 1, kind: input, shape index: {}]   ;;  %s449_s2 = inlined_call_operand.hbm [shape: f32[8,128], index: 2, kind: output, shape index: {}]  }
   0x1   :  { %8 = vsyncpa [#allocation4], 0  ;;  %s396_s9 = smov [#allocation2]  }
   0x2   :  { %s16_s10 = sshll.u32 %s396_s9, 4  ;;  %s17_s10 = int_to_ptr.vmem [resolvable:$true] %s16_s10 }
   0x3   :  { %s360_s11 = scalar_lea.vmem %s17_s10, 2048  ;;  %p365_p1 = scmp.lt.s32.totalorder %s17_s10, %s17_s10 }
   0x4   :  { %p361_p0 = scmp.ne.s32.totalorder %s17_s10, %s360_s11  ;;  %p366_p2 = scmp.lt.s32.totalorder %s360_s11, %s360_s11 }
   0x6   :  { %p367_p3 = por %p366_p2, %p365_p1 }
   0x8   :  { %p368_p4 = pnand %p367_p3, %p361_p0 }
   0xa   :  { %371 = shalt.err (!%p368_p4)
}
   0xb   :  { %s397_s12 = smov 128   ;;  %s398_s13 = smov 8  }
   0xc   :  { %22 = dma.hbm_to_vmem [thread:$0]  %s448_s1, 2048, %s17_s10, [#allocation3], %s397_s12, %s397_s12, %s398_s13  }
   0xd   :  { %392 = dma.done.wait [#allocation3], 2048  }
   0xe   :  { %393 = vsyncadd [#allocation3], 4294965248  ;;  %v399_v0 = vmov 0   ;;  %v28_v1 = vld [vmem:[%s447_s0 + $0x10] sm:$0xff]  ;;  %v26_v2 = vld [vmem:[%s447_s0] sm:$0xff]  ;;  %v34_v25 = vlaneseq  ;;  %v400_v29 = vmov 1.0  }
   0xf   :  { %351 = vset.pattern.permute.xlu1 %v399_v0  ;;  %350 = vset.pattern.permute.xlu0 %v399_v0  ;;  %v29_v3 = vld [vmem:[%s447_s0 + $0x18] sm:$0xff]  ;;  %v27_v4 = vld [vmem:[%s447_s0 + $0x8] sm:$0xff]  ;;  %v98_v6 = vld [vmem:[#allocation2 + $0x70] sm:$0xff] }
  0x10   :  { %43 = vperm.xlu1 %351, %v28_v1   ;;  %37 = vperm.xlu0 %350, %v26_v2   ;;  %v99_v5 = vld [vmem:[#allocation2 + $0x78] sm:$0xff]  ;;  %v97_v7 = vld [vmem:[#allocation2 + $0x68] sm:$0xff]  ;;  %v30_v9 = vld [vmem:[%s447_s0 + $0x20] sm:$0xff]  ;;  %v35_v26 = vand.u32 127, %v34_v25 }
  0x11   :  { %268 = vmatprep.subr.mxu0 %v99_v5  ;;  %312 = vmatprep.subr.mxu1 %v99_v5  ;;  %v31_v8 = vld [vmem:[%s447_s0 + $0x28] sm:$0xff]  ;;  %v96_v10 = vld [vmem:[#allocation2 + $0x60] sm:$0xff]  ;;  %v33_v11 = vld [vmem:[%s447_s0 + $0x38] sm:$0xff] }
  0x12   :  { %269 = vmatpush3.msra.mxu0 %v99_v5  ;;  %328 = vmatpush3.msra.mxu1 %v99_v5  ;;  %v32_v12 = vld [vmem:[%s447_s0 + $0x30] sm:$0xff]  ;;  %v95_v13 = vld [vmem:[#allocation2 + $0x58] sm:$0xff]  ;;  %v93_v15 = vld [vmem:[#allocation2 + $0x48] sm:$0xff]  ;;  %s401_s0 = smov [#allocation5]  }
  0x13   :  { %270 = vmatprep.subr.mxu0 %v98_v6  ;;  %313 = vmatprep.subr.mxu1 %v98_v6  ;;  %v94_v14 = vld [vmem:[#allocation2 + $0x50] sm:$0xff]  ;;  %v92_v16 = vld [vmem:[#allocation2 + $0x40] sm:$0xff]  ;;  %v91_v17 = vld [vmem:[#allocation2 + $0x38] sm:$0xff]  ;;  %s219_s3 = sshll.u32 %s401_s0, 4  ;;  %s220_s3 = int_to_ptr.vmem [resolvable:$true] %s219_s3 }
  0x14   :  { %46 = vperm.xlu1 %351, %v29_v3   ;;  %40 = vperm.xlu0 %350, %v27_v4   ;;  %v90_v18 = vld [vmem:[#allocation2 + $0x30] sm:$0xff]  ;;  %v89_v19 = vld [vmem:[#allocation2 + $0x28] sm:$0xff]  ;;  %v88_v20 = vld [vmem:[#allocation2 + $0x20] sm:$0xff]  ;;  %s372_s4 = scalar_lea.vmem %s220_s3, 128  ;;  %p377_p6 = scmp.lt.s32.totalorder %s220_s3, %s220_s3 }
  0x15   :  { %271 = vmatpush3.msra.mxu0 %v98_v6  ;;  %329 = vmatpush3.msra.mxu1 %v98_v6  ;;  %v87_v21 = vld [vmem:[#allocation2 + $0x18] sm:$0xff]  ;;  %v86_v22 = vld [vmem:[#allocation2 + $0x10] sm:$0xff]  ;;  %v85_v23 = vld [vmem:[#allocation2 + $0x8] sm:$0xff]  ;;  %p373_p5 = scmp.ne.s32.totalorder %s220_s3, %s372_s4  ;;  %p378_p7 = scmp.lt.s32.totalorder %s372_s4, %s372_s4 }
  0x16   :  { %272 = vmatprep.subr.mxu0 %v97_v7  ;;  %314 = vmatprep.subr.mxu1 %v97_v7  ;;  %v84_v24 = vld [vmem:[#allocation2] sm:$0xff] }
  0x17   :  { %273 = vmatpush3.msra.mxu0 %v97_v7  ;;  %330 = vmatpush3.msra.mxu1 %v97_v7  ;;  %p379_p8 = por %p378_p7, %p377_p6 }
  0x18   :  { %52 = vperm.xlu1 %351, %v31_v8   ;;  %49 = vperm.xlu0 %350, %v30_v9  }
  0x19   :  { %274 = vmatprep.subr.mxu0 %v96_v10  ;;  %315 = vmatprep.subr.mxu1 %v96_v10  ;;  %p380_p9 = pnand %p379_p8, %p373_p5 }
  0x1a   :  { %275 = vmatpush3.msra.mxu0 %v96_v10  ;;  %331 = vmatpush3.msra.mxu1 %v96_v10 }
  0x1b   :  { %276 = vmatprep.subr.mxu0 %v95_v13  ;;  %316 = vmatprep.subr.mxu1 %v95_v13 }
  0x1c   :  { %58 = vperm.xlu1 %351, %v33_v11   ;;  %55 = vperm.xlu0 %350, %v32_v12  }
  0x1d   :  { %277 = vmatpush3.msra.mxu0 %v95_v13  ;;  %332 = vmatpush3.msra.mxu1 %v95_v13 }
  0x1e   :  { %278 = vmatprep.subr.mxu0 %v94_v14  ;;  %317 = vmatprep.subr.mxu1 %v94_v14 }
  0x1f   :  { %279 = vmatpush3.msra.mxu0 %v94_v14  ;;  %333 = vmatpush3.msra.mxu1 %v94_v14 }
  0x20   :  { %280 = vmatprep.subr.mxu0 %v93_v15  ;;  %318 = vmatprep.subr.mxu1 %v93_v15 }
  0x21   :  { %281 = vmatpush3.msra.mxu0 %v93_v15  ;;  %334 = vmatpush3.msra.mxu1 %v93_v15 }
  0x22   :  { %282 = vmatprep.subr.mxu0 %v92_v16  ;;  %319 = vmatprep.subr.mxu1 %v92_v16 }
  0x23   :  { %283 = vmatpush3.msra.mxu0 %v92_v16  ;;  %335 = vmatpush3.msra.mxu1 %v92_v16 }
  0x24   :  { %284 = vmatprep.subr.mxu0 %v91_v17  ;;  %320 = vmatprep.subr.mxu1 %v91_v17 }
  0x25   :  { %285 = vmatpush3.msra.mxu0 %v91_v17  ;;  %336 = vmatpush3.msra.mxu1 %v91_v17 }
  0x26   :  { %286 = vmatprep.subr.mxu0 %v90_v18  ;;  %321 = vmatprep.subr.mxu1 %v90_v18 }
  0x27   :  { %287 = vmatpush3.msra.mxu0 %v90_v18  ;;  %337 = vmatpush3.msra.mxu1 %v90_v18 }
  0x28   :  { %288 = vmatprep.subr.mxu0 %v89_v19  ;;  %322 = vmatprep.subr.mxu1 %v89_v19 }
  0x29   :  { %289 = vmatpush3.msra.mxu0 %v89_v19  ;;  %338 = vmatpush3.msra.mxu1 %v89_v19 }
  0x2a   :  { %290 = vmatprep.subr.mxu0 %v88_v20  ;;  %323 = vmatprep.subr.mxu1 %v88_v20 }
  0x2b   :  { %291 = vmatpush3.msra.mxu0 %v88_v20  ;;  %339 = vmatpush3.msra.mxu1 %v88_v20 }
  0x2c   :  { %292 = vmatprep.subr.mxu0 %v87_v21  ;;  %324 = vmatprep.subr.mxu1 %v87_v21 }
  0x2d   :  { %293 = vmatpush3.msra.mxu0 %v87_v21  ;;  %340 = vmatpush3.msra.mxu1 %v87_v21 }
  0x2e   :  { %294 = vmatprep.subr.mxu0 %v86_v22  ;;  %325 = vmatprep.subr.mxu1 %v86_v22 }
  0x2f   :  { %295 = vmatpush3.msra.mxu0 %v86_v22  ;;  %341 = vmatpush3.msra.mxu1 %v86_v22 }
  0x30   :  { %296 = vmatprep.subr.mxu0 %v85_v23  ;;  %326 = vmatprep.subr.mxu1 %v85_v23 }
  0x31   :  { %297 = vmatpush3.msra.mxu0 %v85_v23  ;;  %342 = vmatpush3.msra.mxu1 %v85_v23 }
  0x32   :  { %298 = vmatprep.subr.mxu0 %v84_v24  ;;  %327 = vmatprep.subr.mxu1 %v84_v24 }
  0x33   :  { %299 = vmatpush3.msra.mxu0 %v84_v24  ;;  %343 = vmatpush3.msra.mxu1 %v84_v24 }
  0x8b   :  { %v44_v27 = vpop.permute.xlu1 %43  ;;  %v38_v28 = vpop.permute.xlu0 %37 }
  0x8c   :  { %vm60_vm0 = vcmp.eq.s32.totalorder %v38_v28, %v35_v26  ;;  %vm62_vm1 = vcmp.eq.s32.totalorder %v44_v27, %v35_v26 }
  0x8d   :  { %300 = vmatprep.mubr.msk.f32.mxu0 %vm60_vm0, %v400_v29 }
  0x8f   :  { %v47_v30 = vpop.permute.xlu1 %46  ;;  %v41_v31 = vpop.permute.xlu0 %40 }
  0x90   :  { %vm61_vm2 = vcmp.eq.s32.totalorder %v41_v31, %v35_v26  ;;  %vm63_vm3 = vcmp.eq.s32.totalorder %v47_v30, %v35_v26 }
  0x91   :  { %301 = vmatmul.mubr.msk.f32.vlgmr.msra.gmra.mxu0 %vm61_vm2, %v400_v29 }
  0x92   :  { %303 = vmatprep.mubr.msk.f32.mxu0 %vm62_vm1, %v400_v29 }
  0x93   :  { %v53_v32 = vpop.permute.xlu1 %52  ;;  %v50_v33 = vpop.permute.xlu0 %49 }
  0x94   :  { %vm65_vm4 = vcmp.eq.s32.totalorder %v53_v32, %v35_v26  ;;  %vm64_vm5 = vcmp.eq.s32.totalorder %v50_v33, %v35_v26 }
  0x95   :  { %304 = vmatmul.mubr.msk.f32.gmra.mxu0 %vm63_vm3, %v400_v29  ;;  %306 = vmatprep.mubr.msk.f32.mxu1 %vm64_vm5, %v400_v29 }
  0x96   :  { %307 = vmatmul.mubr.msk.f32.vlgmr.msra.gmra.mxu1 %vm65_vm4, %v400_v29 }
  0x97   :  { %v59_v34 = vpop.permute.xlu1 %58  ;;  %v56_v35 = vpop.permute.xlu0 %55 }
  0x98   :  { %vm67_vm6 = vcmp.eq.s32.totalorder %v59_v34, %v35_v26  ;;  %vm66_vm7 = vcmp.eq.s32.totalorder %v56_v35, %v35_v26 }
  0x99   :  { %309 = vmatprep.mubr.msk.f32.mxu1 %vm66_vm7, %v400_v29 }
  0x9a   :  { %310 = vmatmul.mubr.msk.f32.gmra.mxu1 %vm67_vm6, %v400_v29 }
 0x151   :  { %v302_v36 = vpop.f32.mrf.mxu0 }
 0x153   :  { %v166_v37 = vpop.f32.mrf.mxu0 }
 0x154   :  { %v205_v39 = vmax.f32 %v166_v37, %v302_v36 }
 0x155   :  { %v305_v38 = vpop.f32.mrf.mxu0 }
 0x156   :  { %v308_v40 = vpop.f32.mrf.mxu1 }
 0x157   :  { %v176_v41 = vpop.f32.mrf.mxu0 }
 0x158   :  { %v206_v42 = vmax.f32 %v205_v39, %v176_v41  ;;  %v186_v43 = vpop.f32.mrf.mxu1 }
 0x15a   :  { %v207_v44 = vmax.f32 %v206_v42, %v305_v38  ;;  %v311_v45 = vpop.f32.mrf.mxu1 }
 0x15c   :  { %v208_v46 = vmax.f32 %v207_v44, %v186_v43  ;;  %v196_v48 = vpop.f32.mrf.mxu1 }
 0x15e   :  { %v209_v47 = vmax.f32 %v208_v46, %v308_v40 }
 0x160   :  { %v210_v49 = vmax.f32 %v209_v47, %v196_v48 }
 0x162   :  { %v211_v50 = vmax.f32 %v210_v49, %v311_v45 }
 0x164   :  { %212 = vst [vmem:[#allocation5] sm:$0xff] %v211_v50 }
 0x165   :  { %383 = shalt.err (!%p380_p9)
}
 0x166   :  { %222 = dma.vmem_to_hbm [thread:$0]  %s220_s3, 128, %s449_s2, [#allocation4]  }
 0x167   :  { %394 = dma.done.wait [#allocation4], 128  }
 0x168   :  { %395 = vsyncadd [#allocation4], 4294967168 }
 0x169   :  { %226 = vsyncpa [#allocation3], 1 }
 0x16a   :  { %227 = vsyncpa [#allocation4], 1 }

</bundles_post_ra>
